<compile_context>
chip_gen: v7x
topology: tpu7x:2x2x1
jax: 0.10.0
libtpu: 0.0.40
codegen_flags: <defaults>
</compile_context>

<pallas_src>
import functools

import jax
import jax.numpy as jnp
from jax.experimental import pallas as pl
from jax.experimental.pallas import tpu as pltpu


def _round_up(x, m):
    return (x + m - 1) // m * m


def _vmem_capacity_bytes():
    """Physical VMEM per TensorCore (128 MiB on v5e/v6e, 64 MiB on v7x)."""
    try:
        cap = getattr(pltpu.get_tpu_info(), "vmem_capacity_bytes", None)
        if cap:
            return int(cap)
    except Exception:
        pass
    return 64 * 1024 * 1024          # conservative fallback (v7x-sized)


# ---------------------------------------------------------------------------
# Fused single-pass kernel: whole problem resident in VMEM, x read once.
# ---------------------------------------------------------------------------
def _fused_kernel(x_ref, gamma_ref, beta_ref, wt_ref, o_ref, *, eps, mm_dtype):
    x = x_ref[...].astype(jnp.float32)
    mean = jnp.mean(x, axis=0, keepdims=True)                        # (1, 2C)
    var = jnp.mean(x * x, axis=0, keepdims=True) - mean * mean
    var = jnp.maximum(var, 0.0)                                      # rsqrt guard
    scale = gamma_ref[...] * jax.lax.rsqrt(var + eps)                # (1, 2C)
    shift = beta_ref[...] - mean * scale                             # (1, 2C)
    y = (x * scale + shift).astype(mm_dtype)                         # bf16 stays bf16
    o_ref[...] = jnp.dot(
        y, wt_ref[...], preferred_element_type=jnp.float32).astype(o_ref.dtype)


# ---------------------------------------------------------------------------
# Tiled path, kernel 1: per-chunk raw channel sums of x and x^2.
# Accumulates into per-chunk grid-resident outputs; the ragged last row tile
# is masked in-kernel (no wrapper-side padding of x).
# ---------------------------------------------------------------------------
def _stats_kernel(x_ref, s1_ref, s2_ref, *, n_rows, tile_rows, tiles_per_chunk):
    c = pl.program_id(0)
    i = pl.program_id(1)

    @pl.when(i == 0)
    def _():
        s1_ref[...] = jnp.zeros_like(s1_ref)
        s2_ref[...] = jnp.zeros_like(s2_ref)

    row0 = (c * tiles_per_chunk + i) * tile_rows
    row_ids = row0 + jax.lax.broadcasted_iota(jnp.int32, x_ref.shape, 0)
    x = jnp.where(row_ids < n_rows, x_ref[...].astype(jnp.float32), 0.0)
    s1_ref[...] += jnp.sum(x, axis=0, keepdims=True)[jnp.newaxis]
    s2_ref[...] += jnp.sum(x * x, axis=0, keepdims=True)[jnp.newaxis]


# ---------------------------------------------------------------------------
# Tiled path, kernel 2: pure streaming matmul + bias (BN folded into W'/b').
# The last ragged output block is clipped to the array bounds by Pallas.
# ---------------------------------------------------------------------------
def _matmul_bias_kernel(x_ref, w_ref, b_ref, o_ref):
    acc = jnp.dot(x_ref[...].astype(w_ref.dtype), w_ref[...],
                  preferred_element_type=jnp.float32)
    o_ref[...] = (acc + b_ref[...]).astype(o_ref.dtype)


def _choose_tile_rows(rows, c2, requested, vmem_budget, x_bytes, w_bytes):
    """Largest row tile s.t. the double-buffered streaming x/out tiles plus the
    grid-resident W'/b' (which the pipeliner still double-buffers despite the
    constant index_map) fit the budget."""
    resident = 2 * (c2 * c2 * w_bytes + c2 * 4)          # W' + b', x2 buffers
    per_row = 4 * c2 * x_bytes + 8 * c2                  # x/out tiles (x2) + temps
    max_rows = max(8, (vmem_budget - resident) // per_row)
    t = min(int(requested), int(max_rows), _round_up(rows, 8))
    t = max(8, t - t % 8)                                # sublane multiple
    if t >= 128:
        t -= t % 128                                     # keep the MXU M dim packed
    return t


def patch_merging_forward(x, w_reduction, bn_gamma, bn_beta, *, eps=1e-5,
                          tile_rows=None, fused_vmem_budget=None):
    """x: (B, L, C); w_reduction: (2C, 2C) Linear weight (out = y @ W.T)."""
    B, L, C = x.shape
    if L % 2 == 1:                                       # F.pad(x, (0, 0, 0, L % 2))
        x = jnp.pad(x, ((0, 0), (0, 1), (0, 0)))
        L += 1
    L2 = L // 2
    C2 = 2 * C

    # (B, L, C) -> (B*L2, 2C): row (b,i) == concat(x[b,2i,:], x[b,2i+1,:]).
    xf = x.reshape(B * L2, C2)
    rows = B * L2

    x_bytes = jnp.dtype(x.dtype).itemsize
    # bf16 inputs stay bf16 on the MXU (native rate); everything else runs f32.
    mm_dtype = jnp.bfloat16 if x.dtype == jnp.bfloat16 else jnp.float32
    mm_bytes = jnp.dtype(mm_dtype).itemsize

    wt = w_reduction.T.astype(mm_dtype)                  # (2C_in, 2C_out)
    gamma = bn_gamma.reshape(1, C2).astype(jnp.float32)
    beta = bn_beta.reshape(1, C2).astype(jnp.float32)

    # ---- chip-aware VMEM budgets -------------------------------------------
    vmem_cap = _vmem_capacity_bytes()
    vmem_limit = max(32 << 20, (vmem_cap * 3) // 4)      # ~96 MiB v5e/v6e, ~48 MiB v7x
    if fused_vmem_budget is None:
        fused_vmem_budget = (vmem_limit * 9) // 10
    if tile_rows is None:
        tile_rows = 1024 if vmem_cap >= (100 << 20) else 512
    tiled_budget = (40 << 20) if vmem_cap >= (100 << 20) else (12 << 20)
    compiler_kw = dict(vmem_limit_bytes=int(vmem_limit))

    # ------------------- fused single-pass path -------------------
    # VMEM estimate: x (input dtype) + its f32 upcast (if any) + normalized-y
    # temp + y's mm_dtype cast (if any) + output, plus resident W'/params.
    per_elem = (x_bytes + (0 if x_bytes == 4 else 4) + 4
                + (0 if mm_bytes == 4 else mm_bytes) + x_bytes)
    fused_bytes = rows * C2 * per_elem + C2 * C2 * mm_bytes + 8 * C2 * 4
    if fused_bytes <= fused_vmem_budget:
        vmem = pl.BlockSpec(memory_space=pltpu.MemorySpace.VMEM)
        out = pl.pallas_call(
            functools.partial(_fused_kernel, eps=eps, mm_dtype=mm_dtype),
            out_shape=jax.ShapeDtypeStruct((rows, C2), x.dtype),
            in_specs=[vmem, vmem, vmem, vmem],
            out_specs=vmem,
            compiler_params=pltpu.CompilerParams(**compiler_kw),
        )(xf, gamma, beta, wt)
        return out.reshape(B, L2, C2)

    # ------------------- tiled two-kernel path -------------------
    t = _choose_tile_rows(rows, C2, tile_rows, tiled_budget, x_bytes, mm_bytes)
    n_tiles = int(pl.cdiv(rows, t))
    # Split the stats reduction across (up to) two TensorCores when the tile
    # count splits evenly: per-chunk partial sums + wrapper-side reduce keep
    # the cross-step accumulation correct under "parallel" chunk semantics.
    n_chunks = 2 if (n_tiles >= 2 and n_tiles % 2 == 0) else 1
    tiles_per_chunk = n_tiles // n_chunks

    # kernel 1: raw per-chunk channel sums (reduction over rows)
    s1, s2 = pl.pallas_call(
        functools.partial(_stats_kernel, n_rows=rows, tile_rows=t,
                          tiles_per_chunk=tiles_per_chunk),
        out_shape=(jax.ShapeDtypeStruct((n_chunks, 1, C2), jnp.float32),
                   jax.ShapeDtypeStruct((n_chunks, 1, C2), jnp.float32)),
        grid_spec=pltpu.PrefetchScalarGridSpec(
            num_scalar_prefetch=0,
            grid=(n_chunks, tiles_per_chunk),
            in_specs=[pl.BlockSpec(
                (t, C2), lambda c, i: (c * tiles_per_chunk + i, 0))],
            out_specs=(pl.BlockSpec((1, 1, C2), lambda c, i: (c, 0, 0)),
                       pl.BlockSpec((1, 1, C2), lambda c, i: (c, 0, 0))),
        ),
        compiler_params=pltpu.CompilerParams(
            dimension_semantics=("parallel", "arbitrary"), **compiler_kw),
    )(xf)

    inv_n = 1.0 / float(rows)
    mean = jnp.sum(s1, axis=0).reshape(1, C2) * inv_n
    var = jnp.sum(s2, axis=0).reshape(1, C2) * inv_n - mean * mean   # biased
    var = jnp.maximum(var, 0.0)                                      # rsqrt guard

    # fold BN into the linear layer (one-time O(C2^2) work in XLA):
    #   o = ((x - mean) * inv_std * gamma + beta) @ W^T
    #     = x @ (scale * W^T) + (beta - mean * scale) @ W^T
    scale = gamma * jax.lax.rsqrt(var + eps)                         # (1, 2C)
    wt_f32 = wt.astype(jnp.float32)
    w_fold = (scale.reshape(C2, 1) * wt_f32).astype(mm_dtype)        # (2C, 2C)
    b_fold = (beta - mean * scale) @ wt_f32                          # (1, 2C) f32

    # kernel 2: streaming matmul + bias, W'/b' grid-resident.
    # TODO(synk): W'/b' have constant index_maps but still get two pipeline
    # buffers; pl.Buffered(1) would reclaim that VMEM for large C2 on v7x.
    out = pl.pallas_call(
        _matmul_bias_kernel,
        out_shape=jax.ShapeDtypeStruct((rows, C2), x.dtype),
        grid_spec=pltpu.PrefetchScalarGridSpec(
            num_scalar_prefetch=0,
            grid=(n_tiles,),
            in_specs=[
                pl.BlockSpec((t, C2), lambda i: (i, 0)),      # x rows (stream)
                pl.BlockSpec((C2, C2), lambda i: (0, 0)),     # W' (resident)
                pl.BlockSpec((1, C2), lambda i: (0, 0)),      # b' (resident)
            ],
            out_specs=pl.BlockSpec((t, C2), lambda i: (i, 0)),
        ),
        compiler_params=pltpu.CompilerParams(
            dimension_semantics=("parallel",), **compiler_kw),
    )(xf, w_fold, b_fold)

    return out.reshape(B, L2, C2)


def patch_merging_reference(x, w_reduction, bn_gamma, bn_beta, eps=1e-5):
    """Pure-JAX reference matching the PyTorch forward (training-mode BN)."""
    B, L, C = x.shape
    if L % 2 == 1:
        x = jnp.pad(x, ((0, 0), (0, 1), (0, 0)))
    xc = jnp.concatenate([x[:, 0::2, :], x[:, 1::2, :]], axis=-1)    # (B, L2, 2C)
    mean = jnp.mean(xc, axis=(0, 1))
    var = jnp.mean((xc - mean) ** 2, axis=(0, 1))                    # biased
    y = (xc - mean) / jnp.sqrt(var + eps) * bn_gamma + bn_beta
    return y @ w_reduction.T


if __name__ == "__main__":
    key = jax.random.PRNGKey(0)

    def make_case(k, B, L, dim):
        C2 = 2 * dim
        k_x, k_w, k_g, k_b = jax.random.split(k, 4)
        x = jax.random.normal(k_x, (B, L, dim), dtype=jnp.float32)
        # nn.Linear(2*dim, 2*dim, bias=False) weight: (out=2C, in=2C)
        w = 0.02 * jax.random.normal(k_w, (C2, C2), dtype=jnp.float32)
        # BatchNorm1d(2*dim) affine params (deterministic, non-trivial)
        g = 1.0 + 0.1 * jax.random.normal(k_g, (C2,), dtype=jnp.float32)
        b = 0.1 * jax.random.normal(k_b, (C2,), dtype=jnp.float32)
        return x, w, g, b

    def check(out, ref, name):
        assert out.shape == ref.shape, (name, out.shape, ref.shape)
        err = float(jnp.max(jnp.abs(out - ref)))
        assert jnp.allclose(out, ref, rtol=1e-3, atol=1e-3), (name, err)

    k1, k2, k3 = jax.random.split(key, 3)

    # Case 1: odd L (exercises the length pad); fused single-pass path.
    x, w, g, b = make_case(k1, 2, 15, 64)
    ref = patch_merging_reference(x, w, g, b)
    out = jax.block_until_ready(patch_merging_forward(x, w, g, b))
    check(out, ref, "fused")

    # Same inputs forced onto the tiled path (stats + folded-BN matmul).
    out = jax.block_until_ready(
        patch_merging_forward(x, w, g, b, fused_vmem_budget=0))
    check(out, ref, "tiled")

    # Case 2: rows = B*ceil(L/2) = 33 -> not a multiple of 8 (fused path, no
    # wrapper padding) and not a multiple of the row tile (tiled path, ragged
    # last tile masked in-kernel / clipped output writeback).
    x, w, g, b = make_case(k2, 3, 21, 64)
    ref = patch_merging_reference(x, w, g, b)
    out = jax.block_until_ready(patch_merging_forward(x, w, g, b))
    check(out, ref, "fused_odd_rows")
    out = jax.block_until_ready(
        patch_merging_forward(x, w, g, b, fused_vmem_budget=0, tile_rows=8))
    check(out, ref, "tiled_ragged")

    # Case 3: even number of tiles -> stats pass split into two "parallel"
    # chunks with per-chunk partial sums (v7x two-TensorCore path).
    x, w, g, b = make_case(k3, 4, 32, 64)
    ref = patch_merging_reference(x, w, g, b)
    out = jax.block_until_ready(
        patch_merging_forward(x, w, g, b, fused_vmem_budget=0, tile_rows=8))
    check(out, ref, "tiled_chunked")

    print("KERNEL_OK")
</pallas_src>

<mosaic_0001>
module attributes {stable_mosaic.version = 11 : i64} {
  func.func @_fused_kernel(%arg0: memref<16x128xf32, #tpu.memory_space<vmem>>, %arg1: memref<1x128xf32, #tpu.memory_space<vmem>>, %arg2: memref<1x128xf32, #tpu.memory_space<vmem>>, %arg3: memref<128x128xf32, #tpu.memory_space<vmem>>, %arg4: memref<16x128xf32, #tpu.memory_space<vmem>>) attributes {dimension_semantics = [], scalar_prefetch = 0 : i64, scratch_operands = 0 : i64, tpu.core_type = #tpu.core_type<tc>} {
    %c0 = arith.constant 0 : index
    %c0_0 = arith.constant 0 : index
    %0 = vector.load %arg0[%c0, %c0_0] : memref<16x128xf32, #tpu.memory_space<vmem>>, vector<16x128xf32>
    %cst = arith.constant dense<0.000000e+00> : vector<128xf32>
    %1 = vector.multi_reduction <add>, %0, %cst [0] : vector<16x128xf32> to vector<128xf32>
    %2 = vector.shape_cast %1 : vector<128xf32> to vector<1x128xf32>
    %cst_1 = arith.constant 1.600000e+01 : f32
    %3 = vector.broadcast %cst_1 : f32 to vector<1x128xf32>
    %4 = arith.divf %2, %3 : vector<1x128xf32>
    %5 = arith.mulf %0, %0 : vector<16x128xf32>
    %cst_2 = arith.constant dense<0.000000e+00> : vector<128xf32>
    %6 = vector.multi_reduction <add>, %5, %cst_2 [0] : vector<16x128xf32> to vector<128xf32>
    %7 = vector.shape_cast %6 : vector<128xf32> to vector<1x128xf32>
    %cst_3 = arith.constant 1.600000e+01 : f32
    %8 = vector.broadcast %cst_3 : f32 to vector<1x128xf32>
    %9 = arith.divf %7, %8 : vector<1x128xf32>
    %10 = arith.mulf %4, %4 : vector<1x128xf32>
    %11 = arith.subf %9, %10 : vector<1x128xf32>
    %cst_4 = arith.constant 0.000000e+00 : f32
    %12 = vector.broadcast %cst_4 : f32 to vector<1x128xf32>
    %13 = arith.maximumf %11, %12 : vector<1x128xf32>
    %c0_5 = arith.constant 0 : index
    %c0_6 = arith.constant 0 : index
    %14 = vector.load %arg1[%c0_5, %c0_6] : memref<1x128xf32, #tpu.memory_space<vmem>>, vector<1x128xf32>
    %cst_7 = arith.constant 9.99999974E-6 : f32
    %15 = vector.broadcast %cst_7 : f32 to vector<1x128xf32>
    %16 = arith.addf %13, %15 : vector<1x128xf32>
    %17 = math.rsqrt %16 : vector<1x128xf32>
    %18 = arith.mulf %14, %17 : vector<1x128xf32>
    %c0_8 = arith.constant 0 : index
    %c0_9 = arith.constant 0 : index
    %19 = vector.load %arg2[%c0_8, %c0_9] : memref<1x128xf32, #tpu.memory_space<vmem>>, vector<1x128xf32>
    %20 = arith.mulf %4, %18 : vector<1x128xf32>
    %21 = arith.subf %19, %20 : vector<1x128xf32>
    %22 = vector.broadcast %18 : vector<1x128xf32> to vector<16x128xf32>
    %23 = arith.mulf %0, %22 : vector<16x128xf32>
    %24 = vector.broadcast %21 : vector<1x128xf32> to vector<16x128xf32>
    %25 = arith.addf %23, %24 : vector<16x128xf32>
    %c0_10 = arith.constant 0 : index
    %c0_11 = arith.constant 0 : index
    %26 = vector.load %arg3[%c0_10, %c0_11] : memref<128x128xf32, #tpu.memory_space<vmem>>, vector<128x128xf32>
    %cst_12 = arith.constant dense<0.000000e+00> : vector<16x128xf32>
    %27 = tpu.matmul %25, %26, %cst_12 {dimension_numbers = #tpu.dot_dimension_numbers<[1], [0], [0], [1], [0, 0, 1, 1], [], []>} : vector<16x128xf32>, vector<128x128xf32>, vector<16x128xf32> -> vector<16x128xf32>
    %c0_13 = arith.constant 0 : index
    %c0_14 = arith.constant 0 : index
    %28 = vector.load %arg4[%c0_13, %c0_14] : memref<16x128xf32, #tpu.memory_space<vmem>>, vector<16x128xf32>
    tpu.vector_store %arg4[%c0_13, %c0_14], %27 {strides = array<i32>} : memref<16x128xf32, #tpu.memory_space<vmem>>, vector<16x128xf32>,
    return
  }
}

</mosaic_0001>

<bundles_post_ra>
// kernel: tpu_custom_call.1
= control target key start
LH: loop header
LB: loop body
LE: loop exit
PB: predicated region body
PF: predicated region fallthrough
CT: control target
= control target key end

     0   :  { %9 = vsyncpa [#allocation3], 0  ;;  %s461_s0 = inlined_call_operand.hbm [shape: f32[16,128], index: 0, kind: input, shape index: {}]   ;;  %s462_s1 = inlined_call_operand.vmem [shape: f32[1,128], index: 1, kind: input, shape index: {}]   ;;  %s463_s2 = inlined_call_operand.vmem [shape: f32[1,128], index: 2, kind: input, shape index: {}]   ;;  %s464_s3 = inlined_call_operand.hbm [shape: f32[128,128], index: 3, kind: input, shape index: {}]   ;;  %s465_s4 = inlined_call_operand.hbm [shape: f32[16,128], index: 4, kind: output, shape index: {}]  }
   0x1   :  { %10 = vsyncpa [#allocation6], 0 }
   0x2   :  { %11 = vsyncpa [#allocation4], 0  ;;  %s368_s15 = smov [#allocation2]   ;;  %s296_s19 = scalar_lea.hbm %s461_s0, 256 }
   0x3   :  { %s17_s16 = sshll.u32 %s368_s15, 4  ;;  %p297_p0 = scmp.ne.s32.totalorder %s461_s0, %s296_s19  ;;  %s18_s16 = int_to_ptr.vmem [resolvable:$true] %s17_s16 }
   0x4   :  { %p300_p1 = scmp.lt.u32.totalorder %s296_s19, %s461_s0 }
   0x6   :  { %p302_p2 = pnand %p300_p1, %p297_p0 }
   0x8   :  { %305 = shalt.err (!%p302_p2)
}
   0x9   :  { %s306_s24 = scalar_lea.vmem %s18_s16, 256  ;;  %p311_p4 = scmp.lt.s32.totalorder %s18_s16, %s18_s16 }
   0xa   :  { %p307_p3 = scmp.ne.s32.totalorder %s18_s16, %s306_s24  ;;  %p312_p5 = scmp.lt.s32.totalorder %s306_s24, %s306_s24 }
   0xc   :  { %p313_p6 = por %p312_p5, %p311_p4 }
   0xe   :  { %p314_p7 = pnand %p313_p6, %p307_p3 }
  0x10   :  { %317 = shalt.err (!%p314_p7)
}
  0x11   :  { %s369_s25 = smov 128   ;;  %s370_s26 = smov 8  }
  0x12   :  { %23 = dma.hbm_to_vmem [thread:$0]  %s461_s0, 256, %s18_s16, [#allocation3], %s369_s25, %s369_s25, %s370_s26  }
  0x13   :  { %s371_s29 = smov [#allocation5]   ;;  %s318_s7 = scalar_lea.hbm %s464_s3, 2048 }
  0x14   :  { %s33_s30 = sshll.u32 %s371_s29, 4  ;;  %p319_p8 = scmp.ne.s32.totalorder %s464_s3, %s318_s7  ;;  %s34_s30 = int_to_ptr.vmem [resolvable:$true] %s33_s30 }
  0x15   :  { %p322_p9 = scmp.lt.u32.totalorder %s318_s7, %s464_s3 }
  0x17   :  { %p324_p10 = pnand %p322_p9, %p319_p8 }
  0x19   :  { %327 = shalt.err (!%p324_p10)
}
  0x1a   :  { %s328_s12 = scalar_lea.vmem %s34_s30, 2048  ;;  %p333_p12 = scmp.lt.s32.totalorder %s34_s30, %s34_s30 }
  0x1b   :  { %p329_p11 = scmp.ne.s32.totalorder %s34_s30, %s328_s12  ;;  %p334_p13 = scmp.lt.s32.totalorder %s328_s12, %s328_s12 }
  0x1d   :  { %p335_p0 = por %p334_p13, %p333_p12 }
  0x1f   :  { %p336_p1 = pnand %p335_p0, %p329_p11 }
  0x21   :  { %339 = shalt.err (!%p336_p1)
}
  0x22   :  { %39 = dma.hbm_to_vmem [thread:$0]  %s464_s3, 2048, %s34_s30, [#allocation6], %s369_s25, %s369_s25, %s370_s26  }
  0x23   :  { %362 = dma.done.wait [#allocation3], 256  }
  0x24   :  { %363 = vsyncadd [#allocation3], 4294967040 }
  0x25   :  { %364 = dma.done.wait [#allocation6], 2048  }
  0x26   :  { %365 = vsyncadd [#allocation6], 4294965248  ;;  %v93_v0 = vld [vmem:[#allocation5] sm:$0xff]  ;;  %v94_v1 = vld [vmem:[#allocation5 + $0x8] sm:$0xff]  ;;  %v78_v48 = vlaneseq }
  0x27   :  { %v95_v2 = vld [vmem:[#allocation5 + $0x10] sm:$0xff]  ;;  %v257_v3 = vpack.c.bf16 %v94_v1, %v93_v0  ;;  %v96_v4 = vld [vmem:[#allocation5 + $0x18] sm:$0xff]  ;;  %v97_v6 = vld [vmem:[#allocation5 + $0x20] sm:$0xff] }
  0x28   :  { %v261_v5 = vpack.c.bf16 %v96_v4, %v95_v2  ;;  %v98_v7 = vld [vmem:[#allocation5 + $0x28] sm:$0xff]  ;;  %v428_v9 = vld [vmem:[#allocation2] sm:$0xff]  ;;  %v430_v10 = vld [vmem:[#allocation2 + $0x8] sm:$0xff]  ;;  %v79_v49 = vshrl.u32 %v78_v48, 7 }
  0x29   :  { %258 = vmatprep.subr.bf16.mxu0 %v257_v3  ;;  %v265_v8 = vpack.c.bf16 %v98_v7, %v97_v6  ;;  %v99_v11 = vld [vmem:[#allocation5 + $0x30] sm:$0xff]  ;;  %v100_v12 = vld [vmem:[#allocation5 + $0x38] sm:$0xff]  ;;  %v48_v13 = vadd.f32 %v430_v10, %v428_v9  ;;  %v57_v14 = vmul.f32 %v428_v9, %v428_v9  ;;  %v58_v15 = vmul.f32 %v430_v10, %v430_v10  ;;  %v101_v19 = vld [vmem:[#allocation5 + $0x40] sm:$0xff] }
  0x2a   :  { %260 = vmatpush3.bf16.msra.mxu0 %v257_v3  ;;  %v269_v18 = vpack.c.bf16 %v100_v12, %v99_v11  ;;  %v102_v20 = vld [vmem:[#allocation5 + $0x48] sm:$0xff]  ;;  %v103_v26 = vld [vmem:[#allocation5 + $0x50] sm:$0xff]  ;;  %v104_v27 = vld [vmem:[#allocation5 + $0x58] sm:$0xff]  ;;  %v80_v51 = vsub.s32 0, %v79_v49 }
  0x2b   :  { %262 = vmatprep.subr.bf16.mxu0 %v261_v5  ;;  %v49_v16 = vrot.slane %v48_v13, 4  ;;  %v59_v17 = vadd.f32 %v58_v15, %v57_v14  ;;  %v273_v25 = vpack.c.bf16 %v102_v20, %v101_v19  ;;  %v277_v32 = vpack.c.bf16 %v104_v27, %v103_v26  ;;  %v105_v33 = vld [vmem:[#allocation5 + $0x60] sm:$0xff]  ;;  %v106_v34 = vld [vmem:[#allocation5 + $0x68] sm:$0xff]  ;;  %v107_v40 = vld [vmem:[#allocation5 + $0x70] sm:$0xff] }
  0x2c   :  { %v281_v39 = vpack.c.bf16 %v106_v34, %v105_v33  ;;  %v108_v41 = vld [vmem:[#allocation5 + $0x78] sm:$0xff]  ;;  %v70_v50 = vld [vmem:[%s462_s1] sm:$0x1]  ;;  %s372_s1 = smov [#allocation7]  }
  0x2d   :  { %v50_v21 = vadd.f32 %v49_v16, %v48_v13  ;;  %v60_v22 = vrot.slane %v59_v17, 4  ;;  %v285_v45 = vpack.c.bf16 %v108_v41, %v107_v40  ;;  %v74_v54 = vld [vmem:[%s463_s2] sm:$0x1]  ;;  %s191_s17 = sshll.u32 %s372_s1, 4  ;;  %s192_s17 = int_to_ptr.vmem [resolvable:$true] %s191_s17 }
  0x2e   :  { %264 = vmatpush3.bf16.msra.mxu0 %v261_v5  ;;  %s340_s2 = scalar_lea.vmem %s192_s17, 256  ;;  %p345_p3 = scmp.lt.s32.totalorder %s192_s17, %s192_s17 }
  0x2f   :  { %266 = vmatprep.subr.bf16.mxu0 %v265_v8  ;;  %v51_v23 = vrot.slane %v50_v21, 2  ;;  %v61_v24 = vadd.f32 %v60_v22, %v59_v17  ;;  %p341_p2 = scmp.ne.s32.totalorder %s192_s17, %s340_s2  ;;  %p346_p4 = scmp.lt.s32.totalorder %s340_s2, %s340_s2 }
  0x31   :  { %v52_v28 = vadd.f32 %v51_v23, %v50_v21  ;;  %v62_v29 = vrot.slane %v61_v24, 2  ;;  %p347_p5 = por %p346_p4, %p345_p3 }
  0x32   :  { %268 = vmatpush3.bf16.msra.mxu0 %v265_v8 }
  0x33   :  { %270 = vmatprep.subr.bf16.mxu0 %v269_v18  ;;  %v53_v30 = vrot.slane %v52_v28, 1  ;;  %v63_v31 = vadd.f32 %v62_v29, %v61_v24  ;;  %p348_p6 = pnand %p347_p5, %p341_p2 }
  0x35   :  { %v54_v35 = vadd.f32 %v53_v30, %v52_v28  ;;  %v64_v36 = vrot.slane %v63_v31, 1 }
  0x36   :  { %272 = vmatpush3.bf16.msra.mxu0 %v269_v18 }
  0x37   :  { %274 = vmatprep.subr.bf16.mxu0 %v273_v25  ;;  %v56_v37 = vmul.f32 0.0625, %v54_v35  ;;  %v65_v38 = vadd.f32 %v64_v36, %v63_v31 }
  0x39   :  { %v66_v42 = vmul.f32 0.0625, %v65_v38  ;;  %v67_v43 = vmul.f32 %v56_v37, %v56_v37 }
  0x3a   :  { %276 = vmatpush3.bf16.msra.mxu0 %v273_v25 }
  0x3b   :  { %278 = vmatprep.subr.bf16.mxu0 %v277_v32  ;;  %v68_v44 = vsub.f32 %v66_v42, %v67_v43 }
  0x3d   :  { %v69_v46 = vmax.f32 %v68_v44, 0.0 }
  0x3e   :  { %280 = vmatpush3.bf16.msra.mxu0 %v277_v32 }
  0x3f   :  { %282 = vmatprep.subr.bf16.mxu0 %v281_v39  ;;  %v71_v47 = vadd.f32 1e-05, %v69_v46 }
  0x41   :  { %294 = vrsqrt.f32 %v71_v47 }
  0x42   :  { %284 = vmatpush3.bf16.msra.mxu0 %v281_v39 }
  0x43   :  { %286 = vmatprep.subr.bf16.mxu0 %v285_v45 }
  0x46   :  { %288 = vmatpush3.bf16.msra.mxu0 %v285_v45 }
  0x4b   :  { %v295_v52 = vpop.eup %294 }
  0x4c   :  { %v73_v53 = vmul.f32 %v295_v52, %v70_v50 }
  0x4e   :  { %v75_v55 = vmul.f32 %v73_v53, %v56_v37  ;;  %v81_v56 = vrot.slane %v73_v53, %v80_v51 }
  0x50   :  { %v76_v57 = vsub.f32 %v74_v54, %v75_v55  ;;  %v83_v58 = vmul.f32 %v81_v56, %v428_v9  ;;  %v84_v59 = vmul.f32 %v81_v56, %v430_v10 }
  0x52   :  { %v89_v60 = vrot.slane %v76_v57, %v80_v51 }
  0x54   :  { %v91_v61 = vadd.f32 %v89_v60, %v83_v58  ;;  %v92_v62 = vadd.f32 %v89_v60, %v84_v59 }
  0x56   :  { %254 = vmatprep.mubr.f32.mxu0 %v91_v61 }
  0x57   :  { %255 = vmatmul.mubr.f32.vlgmr.msra.gmra.mrb[0].mxu0 %v92_v62 }
 0x12a   :  { %v256_v63 = vpop.f32.mrb[0].mxu0 }
 0x12b   :  { %185 = vst [vmem:[#allocation7 + $0x8] sm:$0xff] %v256_v63  ;;  %v175_v0 = vpop.f32.mrb[1].mxu0 }
 0x12c   :  { %184 = vst [vmem:[#allocation7] sm:$0xff] %v175_v0 }
 0x12d   :  { %351 = shalt.err (!%p348_p6)
}
 0x12e   :  { %s352_s20 = scalar_lea.hbm %s465_s4, 256 }
 0x12f   :  { %p353_p7 = scmp.ne.s32.totalorder %s465_s4, %s352_s20  ;;  %p356_p8 = scmp.lt.u32.totalorder %s352_s20, %s465_s4 }
 0x131   :  { %p358_p9 = pnand %p356_p8, %p353_p7 }
 0x133   :  { %361 = shalt.err (!%p358_p9)
}
 0x134   :  { %197 = dma.vmem_to_hbm [thread:$0]  %s192_s17, 256, %s465_s4, [#allocation4], %s369_s25, %s369_s25, %s370_s26  }
 0x135   :  { %366 = dma.done.wait [#allocation4], 256  }
 0x136   :  { %367 = vsyncadd [#allocation4], 4294967040 }
 0x137   :  { %201 = vsyncpa [#allocation3], 1 }
 0x138   :  { %202 = vsyncpa [#allocation6], 1 }
 0x139   :  { %203 = vsyncpa [#allocation4], 1 }

</bundles_post_ra>
